<compile_context>
chip_gen: v6e
topology: v6e:2x2x1
jax: 0.10.0
libtpu: 0.0.40
codegen_flags: <defaults>
</compile_context>

<pallas_src>
import jax
import jax.numpy as jnp
from jax.experimental import pallas as pl
from jax.experimental.pallas import tpu as pltpu

# hyperPara (synthetic, small & deterministic)
Dim_D_Input = 16
Dim_Hidden = 32
Dim_D_Output = 1

_PACK = 8                # samples packed along the lane axis per packed row
_MAX_TILE_ROWS = 512     # packed rows per grid step (= 4096 samples / tile)


def _round_up(x, m):
    return ((x + m - 1) // m) * m


def _block_diag(w, p):
    """(k, n) -> (p*k, p*n) block-diagonal with `w` repeated on the diagonal."""
    k, n = w.shape
    eye = jnp.eye(p, dtype=w.dtype)
    return (eye[:, None, :, None] * w[None, :, None, :]).reshape(p * k, p * n)


def _discriminator_kernel(x_ref,
                          w1_ref, b1_ref,
                          w2_ref, b2_ref,
                          w3_ref, b3_ref,
                          w4_ref, b4_ref,
                          out_ref):
    """Fused 4-layer MLP on one lane-packed batch tile: (TILE_R, 128) -> (TILE_R, 8)."""
    h = jnp.dot(x_ref[...], w1_ref[...], preferred_element_type=jnp.float32) + b1_ref[...]
    h = jnp.maximum(h, 0.0)
    h = jnp.dot(h, w2_ref[...], preferred_element_type=jnp.float32) + b2_ref[...]
    h = jnp.maximum(h, 0.0)
    h = jnp.dot(h, w3_ref[...], preferred_element_type=jnp.float32) + b3_ref[...]
    h = jnp.maximum(h, 0.0)
    h = jnp.dot(h, w4_ref[...], preferred_element_type=jnp.float32) + b4_ref[...]
    out_ref[...] = jax.nn.sigmoid(h)   # exp + reciprocal land on the EUP


def discriminator_forward(x, params, tile_rows=_MAX_TILE_ROWS):
    """x: (B, Dim_D_Input) f32. Returns flat (B * Dim_D_Output,) f32 (== .view(-1))."""
    (w1, b1), (w2, b2), (w3, b3), (w4, b4) = params
    B, din = x.shape
    assert din == Dim_D_Input

    # --- lane-pack _PACK samples per row: (B, 16) -> (rows_pad, 128) --------
    rows = _round_up(B, _PACK) // _PACK                       # packed rows needed
    tile_rows = min(_round_up(tile_rows, 8), _round_up(rows, 8))
    rows_pad = _round_up(rows, tile_rows)
    b_pad = rows_pad * _PACK
    if b_pad != B:
        x = jnp.pad(x, ((0, b_pad - B), (0, 0)))
    xp = x.reshape(rows_pad, _PACK * Dim_D_Input)             # (rows_pad, 128)

    # --- block-diagonal weights: 8 samples share one set of MXU lanes -------
    w1p, b1p = _block_diag(w1, _PACK), jnp.tile(b1, (1, _PACK))   # (128, 256), (1, 256)
    w2p, b2p = _block_diag(w2, _PACK), jnp.tile(b2, (1, _PACK))   # (256, 256), (1, 256)
    w3p, b3p = _block_diag(w3, _PACK), jnp.tile(b3, (1, _PACK))   # (256, 256), (1, 256)
    w4p, b4p = _block_diag(w4, _PACK), jnp.tile(b4, (1, _PACK))   # (256,   8), (1,   8)

    n_tiles = rows_pad // tile_rows
    dout_p = _PACK * Dim_D_Output

    x_spec = pl.BlockSpec((tile_rows, _PACK * Dim_D_Input), lambda i: (i, 0))
    out_spec = pl.BlockSpec((tile_rows, dout_p), lambda i: (i, 0))

    def const_spec(a):
        # Full array, same block index every grid step -> fetched once, stays
        # VMEM-resident; DMA slot is left free for the x / out streams.
        return pl.BlockSpec(a.shape, lambda i: (0, 0))

    out = pl.pallas_call(
        _discriminator_kernel,
        grid=(n_tiles,),
        out_shape=jax.ShapeDtypeStruct((rows_pad, dout_p), jnp.float32),
        in_specs=[x_spec,
                  const_spec(w1p), const_spec(b1p),
                  const_spec(w2p), const_spec(b2p),
                  const_spec(w3p), const_spec(b3p),
                  const_spec(w4p), const_spec(b4p)],
        out_specs=out_spec,
        compiler_params=pltpu.CompilerParams(
            dimension_semantics=("parallel",)),   # shard batch tiles across v7x TCs
    )(xp, w1p, b1p, w2p, b2p, w3p, b3p, w4p, b4p)

    # (rows_pad, 8) row-major == flat sample order; drop padding.
    return out.reshape(-1)[: B * Dim_D_Output]


def init_params(key):
    """Deterministic init; weights stored as (in, out), biases as (1, out)."""
    shapes = [
        (Dim_D_Input, Dim_Hidden),
        (Dim_Hidden, Dim_Hidden),
        (Dim_Hidden, Dim_Hidden),
        (Dim_Hidden, Dim_D_Output),
    ]
    params = []
    for shp in shapes:
        key, kw, kb = jax.random.split(key, 3)
        fan_in = shp[0]
        bound = 1.0 / jnp.sqrt(fan_in)   # PyTorch nn.Linear default init range
        w = jax.random.uniform(kw, shp, jnp.float32, -bound, bound)
        b = jax.random.uniform(kb, (1, shp[1]), jnp.float32, -bound, bound)
        params.append((w, b))
    return params


def reference_forward(x, params):
    """Pure-JAX reference for a sanity check."""
    (w1, b1), (w2, b2), (w3, b3), (w4, b4) = params
    h = jnp.maximum(x @ w1 + b1, 0.0)
    h = jnp.maximum(h @ w2 + b2, 0.0)
    h = jnp.maximum(h @ w3 + b3, 0.0)
    h = jax.nn.sigmoid(h @ w4 + b4)
    return h.reshape(-1)


if __name__ == "__main__":
    key = jax.random.PRNGKey(0)
    kx, kp = jax.random.split(key)
    params = init_params(kp)

    # Small demo batch (packs into a single 8-row grid tile).
    B = 8
    x = jax.random.normal(kx, (B, Dim_D_Input), dtype=jnp.float32)
    out = jax.block_until_ready(discriminator_forward(x, params))
    ref = reference_forward(x, params)
    assert out.shape == (B * Dim_D_Output,)
    assert jnp.allclose(out, ref, atol=1e-5, rtol=1e-5)

    # Ragged batch exercising zero-padding + a multi-step, pipelined batch grid.
    B2 = 1000
    x2 = jax.random.normal(kx, (B2, Dim_D_Input), dtype=jnp.float32)
    out2 = jax.block_until_ready(discriminator_forward(x2, params, tile_rows=64))
    ref2 = reference_forward(x2, params)
    assert out2.shape == (B2 * Dim_D_Output,)
    assert jnp.allclose(out2, ref2, atol=1e-5, rtol=1e-5)

    print("KERNEL_OK")
</pallas_src>

<mosaic_0001>
module attributes {stable_mosaic.version = 11 : i64} {
  func.func @_discriminator_kernel(%arg0: i32, %arg1: memref<8x128xf32, #tpu.memory_space<vmem>>, %arg2: memref<128x256xf32, #tpu.memory_space<vmem>>, %arg3: memref<1x256xf32, #tpu.memory_space<vmem>>, %arg4: memref<256x256xf32, #tpu.memory_space<vmem>>, %arg5: memref<1x256xf32, #tpu.memory_space<vmem>>, %arg6: memref<256x256xf32, #tpu.memory_space<vmem>>, %arg7: memref<1x256xf32, #tpu.memory_space<vmem>>, %arg8: memref<256x8xf32, #tpu.memory_space<vmem>>, %arg9: memref<1x8xf32, #tpu.memory_space<vmem>>, %arg10: memref<8x8xf32, #tpu.memory_space<vmem>>) attributes {dimension_semantics = [#tpu.dimension_semantics<parallel>], iteration_bounds = array<i64: 1>, scalar_prefetch = 0 : i64, scratch_operands = 0 : i64, tpu.core_type = #tpu.core_type<tc>, window_params = [{transform_indices = @transform_0, window_bounds = array<i64: 8, 128>}, {pipeline_mode = #tpu.pipeline_mode<synchronous>, transform_indices = @transform_1, window_bounds = array<i64: 128, 256>}, {pipeline_mode = #tpu.pipeline_mode<synchronous>, transform_indices = @transform_2, window_bounds = array<i64: 1, 256>}, {pipeline_mode = #tpu.pipeline_mode<synchronous>, transform_indices = @transform_3, window_bounds = array<i64: 256, 256>}, {pipeline_mode = #tpu.pipeline_mode<synchronous>, transform_indices = @transform_4, window_bounds = array<i64: 1, 256>}, {pipeline_mode = #tpu.pipeline_mode<synchronous>, transform_indices = @transform_5, window_bounds = array<i64: 256, 256>}, {pipeline_mode = #tpu.pipeline_mode<synchronous>, transform_indices = @transform_6, window_bounds = array<i64: 1, 256>}, {pipeline_mode = #tpu.pipeline_mode<synchronous>, transform_indices = @transform_7, window_bounds = array<i64: 256, 8>}, {pipeline_mode = #tpu.pipeline_mode<synchronous>, transform_indices = @transform_8, window_bounds = array<i64: 1, 8>}, {transform_indices = @transform_9, window_bounds = array<i64: 8, 8>}]} {
    %c0 = arith.constant 0 : index
    %c0_0 = arith.constant 0 : index
    %0 = vector.load %arg1[%c0, %c0_0] : memref<8x128xf32, #tpu.memory_space<vmem>>, vector<8x128xf32>
    %c0_1 = arith.constant 0 : index
    %c0_2 = arith.constant 0 : index
    %1 = vector.load %arg2[%c0_1, %c0_2] : memref<128x256xf32, #tpu.memory_space<vmem>>, vector<128x256xf32>
    %cst = arith.constant dense<0.000000e+00> : vector<8x256xf32>
    %2 = tpu.matmul %0, %1, %cst {dimension_numbers = #tpu.dot_dimension_numbers<[1], [0], [0], [1], [0, 0, 1, 1], [], []>} : vector<8x128xf32>, vector<128x256xf32>, vector<8x256xf32> -> vector<8x256xf32>
    %c0_3 = arith.constant 0 : index
    %c0_4 = arith.constant 0 : index
    %3 = vector.load %arg3[%c0_3, %c0_4] : memref<1x256xf32, #tpu.memory_space<vmem>>, vector<1x256xf32>
    %4 = vector.broadcast %3 : vector<1x256xf32> to vector<8x256xf32>
    %5 = arith.addf %2, %4 : vector<8x256xf32>
    %cst_5 = arith.constant 0.000000e+00 : f32
    %6 = vector.broadcast %cst_5 : f32 to vector<8x256xf32>
    %7 = arith.maximumf %5, %6 : vector<8x256xf32>
    %c0_6 = arith.constant 0 : index
    %c0_7 = arith.constant 0 : index
    %8 = vector.load %arg4[%c0_6, %c0_7] : memref<256x256xf32, #tpu.memory_space<vmem>>, vector<256x256xf32>
    %cst_8 = arith.constant dense<0.000000e+00> : vector<8x256xf32>
    %9 = tpu.matmul %7, %8, %cst_8 {dimension_numbers = #tpu.dot_dimension_numbers<[1], [0], [0], [1], [0, 0, 1, 1], [], []>} : vector<8x256xf32>, vector<256x256xf32>, vector<8x256xf32> -> vector<8x256xf32>
    %c0_9 = arith.constant 0 : index
    %c0_10 = arith.constant 0 : index
    %10 = vector.load %arg5[%c0_9, %c0_10] : memref<1x256xf32, #tpu.memory_space<vmem>>, vector<1x256xf32>
    %11 = vector.broadcast %10 : vector<1x256xf32> to vector<8x256xf32>
    %12 = arith.addf %9, %11 : vector<8x256xf32>
    %cst_11 = arith.constant 0.000000e+00 : f32
    %13 = vector.broadcast %cst_11 : f32 to vector<8x256xf32>
    %14 = arith.maximumf %12, %13 : vector<8x256xf32>
    %c0_12 = arith.constant 0 : index
    %c0_13 = arith.constant 0 : index
    %15 = vector.load %arg6[%c0_12, %c0_13] : memref<256x256xf32, #tpu.memory_space<vmem>>, vector<256x256xf32>
    %cst_14 = arith.constant dense<0.000000e+00> : vector<8x256xf32>
    %16 = tpu.matmul %14, %15, %cst_14 {dimension_numbers = #tpu.dot_dimension_numbers<[1], [0], [0], [1], [0, 0, 1, 1], [], []>} : vector<8x256xf32>, vector<256x256xf32>, vector<8x256xf32> -> vector<8x256xf32>
    %c0_15 = arith.constant 0 : index
    %c0_16 = arith.constant 0 : index
    %17 = vector.load %arg7[%c0_15, %c0_16] : memref<1x256xf32, #tpu.memory_space<vmem>>, vector<1x256xf32>
    %18 = vector.broadcast %17 : vector<1x256xf32> to vector<8x256xf32>
    %19 = arith.addf %16, %18 : vector<8x256xf32>
    %cst_17 = arith.constant 0.000000e+00 : f32
    %20 = vector.broadcast %cst_17 : f32 to vector<8x256xf32>
    %21 = arith.maximumf %19, %20 : vector<8x256xf32>
    %c0_18 = arith.constant 0 : index
    %c0_19 = arith.constant 0 : index
    %22 = vector.load %arg8[%c0_18, %c0_19] : memref<256x8xf32, #tpu.memory_space<vmem>>, vector<256x8xf32>
    %cst_20 = arith.constant dense<0.000000e+00> : vector<8x8xf32>
    %23 = tpu.matmul %21, %22, %cst_20 {dimension_numbers = #tpu.dot_dimension_numbers<[1], [0], [0], [1], [0, 0, 1, 1], [], []>} : vector<8x256xf32>, vector<256x8xf32>, vector<8x8xf32> -> vector<8x8xf32>
    %c0_21 = arith.constant 0 : index
    %c0_22 = arith.constant 0 : index
    %24 = vector.load %arg9[%c0_21, %c0_22] : memref<1x8xf32, #tpu.memory_space<vmem>>, vector<1x8xf32>
    %25 = vector.broadcast %24 : vector<1x8xf32> to vector<8x8xf32>
    %26 = arith.addf %23, %25 : vector<8x8xf32>
    %27 = arith.negf %26 : vector<8x8xf32>
    %28 = math.exp %27 : vector<8x8xf32>
    %cst_23 = arith.constant 1.000000e+00 : f32
    %29 = vector.broadcast %cst_23 : f32 to vector<8x8xf32>
    %30 = arith.addf %29, %28 : vector<8x8xf32>
    %31 = arith.divf %29, %30 : vector<8x8xf32>
    %c0_24 = arith.constant 0 : index
    %c0_25 = arith.constant 0 : index
    %32 = vector.load %arg10[%c0_24, %c0_25] : memref<8x8xf32, #tpu.memory_space<vmem>>, vector<8x8xf32>
    tpu.vector_store %arg10[%c0_24, %c0_25], %31 {strides = array<i32>} : memref<8x8xf32, #tpu.memory_space<vmem>>, vector<8x8xf32>,
    return
  }
  func.func @transform_0(%arg0: i32) -> (i32, i32) {
    %c0_i32 = arith.constant 0 : i32
    %c0_i32_0 = arith.constant 0 : i32
    return %arg0, %c0_i32 : i32, i32
  }
  func.func @transform_1(%arg0: i32) -> (i32, i32) {
    %c0_i32 = arith.constant 0 : i32
    %c0_i32_0 = arith.constant 0 : i32
    %c0_i32_1 = arith.constant 0 : i32
    return %c0_i32, %c0_i32_0 : i32, i32
  }
  func.func @transform_2(%arg0: i32) -> (i32, i32) {
    %c0_i32 = arith.constant 0 : i32
    %c0_i32_0 = arith.constant 0 : i32
    %c0_i32_1 = arith.constant 0 : i32
    return %c0_i32, %c0_i32_0 : i32, i32
  }
  func.func @transform_3(%arg0: i32) -> (i32, i32) {
    %c0_i32 = arith.constant 0 : i32
    %c0_i32_0 = arith.constant 0 : i32
    %c0_i32_1 = arith.constant 0 : i32
    return %c0_i32, %c0_i32_0 : i32, i32
  }
  func.func @transform_4(%arg0: i32) -> (i32, i32) {
    %c0_i32 = arith.constant 0 : i32
    %c0_i32_0 = arith.constant 0 : i32
    %c0_i32_1 = arith.constant 0 : i32
    return %c0_i32, %c0_i32_0 : i32, i32
  }
  func.func @transform_5(%arg0: i32) -> (i32, i32) {
    %c0_i32 = arith.constant 0 : i32
    %c0_i32_0 = arith.constant 0 : i32
    %c0_i32_1 = arith.constant 0 : i32
    return %c0_i32, %c0_i32_0 : i32, i32
  }
  func.func @transform_6(%arg0: i32) -> (i32, i32) {
    %c0_i32 = arith.constant 0 : i32
    %c0_i32_0 = arith.constant 0 : i32
    %c0_i32_1 = arith.constant 0 : i32
    return %c0_i32, %c0_i32_0 : i32, i32
  }
  func.func @transform_7(%arg0: i32) -> (i32, i32) {
    %c0_i32 = arith.constant 0 : i32
    %c0_i32_0 = arith.constant 0 : i32
    %c0_i32_1 = arith.constant 0 : i32
    return %c0_i32, %c0_i32_0 : i32, i32
  }
  func.func @transform_8(%arg0: i32) -> (i32, i32) {
    %c0_i32 = arith.constant 0 : i32
    %c0_i32_0 = arith.constant 0 : i32
    %c0_i32_1 = arith.constant 0 : i32
    return %c0_i32, %c0_i32_0 : i32, i32
  }
  func.func @transform_9(%arg0: i32) -> (i32, i32) {
    %c0_i32 = arith.constant 0 : i32
    %c0_i32_0 = arith.constant 0 : i32
    return %arg0, %c0_i32 : i32, i32
  }
}

</mosaic_0001>

<bundles_post_ra>
// kernel: tpu_custom_call.1
= control target key start
LH: loop header
LB: loop body
LE: loop exit
PB: predicated region body
PF: predicated region fallthrough
CT: control target
= control target key end

     0   :  { %14 = vsyncpa [#allocation3], 0  ;;  %s1005_s0 = inlined_call_operand.vmem [shape: f32[8,128], index: 0, kind: input, shape index: {}]   ;;  %s1006_s1 = inlined_call_operand.vmem [shape: f32[128,256], index: 1, kind: input, shape index: {}]   ;;  %s1007_s2 = inlined_call_operand.vmem [shape: f32[1,256], index: 2, kind: input, shape index: {}]   ;;  %s1008_s3 = inlined_call_operand.hbm [shape: f32[256,256], index: 3, kind: input, shape index: {}]   ;;  %s1009_s4 = inlined_call_operand.vmem [shape: f32[1,256], index: 4, kind: input, shape index: {}]   ;;  %s1010_s5 = inlined_call_operand.hbm [shape: f32[256,256], index: 5, kind: input, shape index: {}]   ;;  %s1011_s6 = inlined_call_operand.vmem [shape: f32[1,256], index: 6, kind: input, shape index: {}]   ;;  %s1012_s7 = inlined_call_operand.vmem [shape: f32[256,8], index: 7, kind: input, shape index: {}]   ;;  %s1013_s8 = inlined_call_operand.vmem [shape: f32[1,8], index: 8, kind: input, shape index: {}]   ;;  %s1014_s9 = inlined_call_operand.hbm [shape: f32[8,8], index: 9, kind: output, shape index: {}]  }
   0x1   :  { %15 = vsyncpa [#allocation6], 0 }
   0x2   :  { %16 = vsyncpa [#allocation4], 0  ;;  %s723_s30 = smov [#allocation2]  }
   0x3   :  { %s28_s10 = sshll.u32 %s723_s30, 4  ;;  %s29_s10 = int_to_ptr.vmem [resolvable:$true] %s28_s10 }
   0x4   :  { %s665_s11 = scalar_lea.vmem %s29_s10, 8192  ;;  %p670_p1 = scmp.lt.s32.totalorder %s29_s10, %s29_s10 }
   0x5   :  { %p666_p0 = scmp.ne.s32.totalorder %s29_s10, %s665_s11  ;;  %p671_p2 = scmp.lt.s32.totalorder %s665_s11, %s665_s11 }
   0x7   :  { %p672_p3 = por %p671_p2, %p670_p1 }
   0x9   :  { %p673_p4 = pnand %p672_p3, %p666_p0 }
   0xb   :  { %676 = shalt.err (!%p673_p4)
}
   0xc   :  { %s724_s12 = smov 256   ;;  %s725_s13 = smov 16  }
   0xd   :  { %34 = dma.hbm_to_vmem [thread:$0]  %s1008_s3, 8192, %s29_s10, [#allocation3], %s724_s12, %s724_s12, %s725_s13  }
   0xe   :  { %s726_s16 = smov [#allocation5]  }
   0xf   :  { %s42_s17 = sshll.u32 %s726_s16, 4  ;;  %s43_s17 = int_to_ptr.vmem [resolvable:$true] %s42_s17 }
  0x10   :  { %s685_s18 = scalar_lea.vmem %s43_s17, 8192  ;;  %p690_p6 = scmp.lt.s32.totalorder %s43_s17, %s43_s17 }
  0x11   :  { %p686_p5 = scmp.ne.s32.totalorder %s43_s17, %s685_s18  ;;  %p691_p7 = scmp.lt.s32.totalorder %s685_s18, %s685_s18 }
  0x13   :  { %p692_p8 = por %p691_p7, %p690_p6 }
  0x15   :  { %p693_p9 = pnand %p692_p8, %p686_p5 }
  0x17   :  { %696 = shalt.err (!%p693_p9)
}
  0x18   :  { %48 = dma.hbm_to_vmem [thread:$0]  %s1010_s5, 8192, %s43_s17, [#allocation6], %s724_s12, %s724_s12, %s725_s13  }
  0x19   :  { %717 = dma.done.wait [#allocation3], 8192  }
  0x1a   :  { %718 = vsyncadd [#allocation3], 4294959104 }
  0x1b   :  { %719 = dma.done.wait [#allocation6], 8192  }
  0x1c   :  { %720 = vsyncadd [#allocation6], 4294959104  ;;  %v727_v0 = vmov 0.0   ;;  %v93_v1 = vld [vmem:[%s1006_s1 + $0xf8] sm:$0xff]  ;;  %v92_v2 = vld [vmem:[%s1006_s1 + $0xf0] sm:$0xff]  ;;  %vm592_vm0 = vcmask 64512  }
  0x1d   :  { %170 = vmatprep.mubr.f32.mxu0 %v727_v0  ;;  %v91_v3 = vld [vmem:[%s1006_s1 + $0xe8] sm:$0xff]  ;;  %106 = vmatprep.subr.mxu0 %v93_v1  ;;  %v90_v4 = vld [vmem:[%s1006_s1 + $0xe0] sm:$0xff]  ;;  %v89_v5 = vld [vmem:[%s1006_s1 + $0xd8] sm:$0xff] }
  0x1e   :  { %107 = vmatpush1.msra.mxu0 %v92_v2  ;;  %v88_v6 = vld [vmem:[%s1006_s1 + $0xd0] sm:$0xff]  ;;  %v87_v7 = vld [vmem:[%s1006_s1 + $0xc8] sm:$0xff]  ;;  %v86_v8 = vld [vmem:[%s1006_s1 + $0xc0] sm:$0xff] }
  0x1f   :  { %108 = vmatprep.subr.mxu0 %v91_v3  ;;  %v85_v9 = vld [vmem:[%s1006_s1 + $0xb8] sm:$0xff]  ;;  %v84_v10 = vld [vmem:[%s1006_s1 + $0xb0] sm:$0xff]  ;;  %v83_v11 = vld [vmem:[%s1006_s1 + $0xa8] sm:$0xff] }
  0x20   :  { %109 = vmatpush1.msra.mxu0 %v90_v4  ;;  %v82_v12 = vld [vmem:[%s1006_s1 + $0xa0] sm:$0xff]  ;;  %v81_v13 = vld [vmem:[%s1006_s1 + $0x98] sm:$0xff]  ;;  %v80_v14 = vld [vmem:[%s1006_s1 + $0x90] sm:$0xff] }
  0x21   :  { %110 = vmatprep.subr.mxu0 %v89_v5  ;;  %v210_v15 = vld [vmem:[#allocation2 + $0xf8] sm:$0xff]  ;;  %v209_v16 = vld [vmem:[#allocation2 + $0xf0] sm:$0xff]  ;;  %v208_v17 = vld [vmem:[#allocation2 + $0xe8] sm:$0xff] }
  0x22   :  { %111 = vmatpush1.msra.mxu0 %v88_v6  ;;  %v79_v18 = vld [vmem:[%s1006_s1 + $0x88] sm:$0xff]  ;;  %255 = vmatprep.subr.mxu1 %v210_v15  ;;  %v207_v19 = vld [vmem:[#allocation2 + $0xe0] sm:$0xff]  ;;  %v206_v21 = vld [vmem:[#allocation2 + $0xd8] sm:$0xff] }
  0x23   :  { %112 = vmatprep.subr.mxu0 %v87_v7  ;;  %v78_v20 = vld [vmem:[%s1006_s1 + $0x80] sm:$0xff]  ;;  %256 = vmatpush1.msra.mxu1 %v209_v16  ;;  %v77_v22 = vld [vmem:[%s1006_s1 + $0x78] sm:$0xff]  ;;  %v205_v23 = vld [vmem:[#allocation2 + $0xd0] sm:$0xff] }
  0x24   :  { %113 = vmatpush1.msra.mxu0 %v86_v8  ;;  %257 = vmatprep.subr.mxu1 %v208_v17  ;;  %v76_v24 = vld [vmem:[%s1006_s1 + $0x70] sm:$0xff]  ;;  %v204_v25 = vld [vmem:[#allocation2 + $0xc8] sm:$0xff]  ;;  %v203_v27 = vld [vmem:[#allocation2 + $0xc0] sm:$0xff] }
  0x25   :  { %114 = vmatprep.subr.mxu0 %v85_v9  ;;  %258 = vmatpush1.msra.mxu1 %v207_v19  ;;  %v75_v26 = vld [vmem:[%s1006_s1 + $0x68] sm:$0xff]  ;;  %v74_v28 = vld [vmem:[%s1006_s1 + $0x60] sm:$0xff]  ;;  %v202_v29 = vld [vmem:[#allocation2 + $0xb8] sm:$0xff] }
  0x26   :  { %115 = vmatpush1.msra.mxu0 %v84_v10  ;;  %259 = vmatprep.subr.mxu1 %v206_v21  ;;  %v73_v30 = vld [vmem:[%s1006_s1 + $0x58] sm:$0xff]  ;;  %v201_v31 = vld [vmem:[#allocation2 + $0xb0] sm:$0xff]  ;;  %v200_v33 = vld [vmem:[#allocation2 + $0xa8] sm:$0xff] }
  0x27   :  { %116 = vmatprep.subr.mxu0 %v83_v11  ;;  %260 = vmatpush1.msra.mxu1 %v205_v23  ;;  %v72_v32 = vld [vmem:[%s1006_s1 + $0x50] sm:$0xff]  ;;  %v71_v34 = vld [vmem:[%s1006_s1 + $0x48] sm:$0xff]  ;;  %v199_v35 = vld [vmem:[#allocation2 + $0xa0] sm:$0xff] }
  0x28   :  { %117 = vmatpush1.msra.mxu0 %v82_v12  ;;  %261 = vmatprep.subr.mxu1 %v204_v25  ;;  %v70_v36 = vld [vmem:[%s1006_s1 + $0x40] sm:$0xff]  ;;  %v198_v37 = vld [vmem:[#allocation2 + $0x98] sm:$0xff]  ;;  %v197_v39 = vld [vmem:[#allocation2 + $0x90] sm:$0xff] }
  0x29   :  { %118 = vmatprep.subr.mxu0 %v81_v13  ;;  %262 = vmatpush1.msra.mxu1 %v203_v27  ;;  %v69_v38 = vld [vmem:[%s1006_s1 + $0x38] sm:$0xff]  ;;  %v68_v40 = vld [vmem:[%s1006_s1 + $0x30] sm:$0xff]  ;;  %v196_v41 = vld [vmem:[#allocation2 + $0x88] sm:$0xff] }
  0x2a   :  { %119 = vmatpush1.msra.mxu0 %v80_v14  ;;  %263 = vmatprep.subr.mxu1 %v202_v29  ;;  %v67_v42 = vld [vmem:[%s1006_s1 + $0x28] sm:$0xff]  ;;  %v195_v43 = vld [vmem:[#allocation2 + $0x80] sm:$0xff]  ;;  %v194_v45 = vld [vmem:[#allocation2 + $0x78] sm:$0xff] }
  0x2b   :  { %120 = vmatprep.subr.mxu0 %v79_v18  ;;  %264 = vmatpush1.msra.mxu1 %v201_v31  ;;  %v66_v44 = vld [vmem:[%s1006_s1 + $0x20] sm:$0xff]  ;;  %v65_v46 = vld [vmem:[%s1006_s1 + $0x18] sm:$0xff]  ;;  %v193_v47 = vld [vmem:[#allocation2 + $0x70] sm:$0xff] }
  0x2c   :  { %121 = vmatpush1.msra.mxu0 %v78_v20  ;;  %265 = vmatprep.subr.mxu1 %v200_v33  ;;  %v64_v48 = vld [vmem:[%s1006_s1 + $0x10] sm:$0xff]  ;;  %v192_v49 = vld [vmem:[#allocation2 + $0x68] sm:$0xff]  ;;  %v191_v51 = vld [vmem:[#allocation2 + $0x60] sm:$0xff] }
  0x2d   :  { %122 = vmatprep.subr.mxu0 %v77_v22  ;;  %266 = vmatpush1.msra.mxu1 %v199_v35  ;;  %v63_v50 = vld [vmem:[%s1006_s1 + $0x8] sm:$0xff]  ;;  %v62_v52 = vld [vmem:[%s1006_s1] sm:$0xff]  ;;  %v190_v53 = vld [vmem:[#allocation2 + $0x58] sm:$0xff] }
  0x2e   :  { %123 = vmatpush1.msra.mxu0 %v76_v24  ;;  %267 = vmatprep.subr.mxu1 %v198_v37  ;;  %v61_v54 = vld [vmem:[%s1005_s0] sm:$0xff]  ;;  %v189_v55 = vld [vmem:[#allocation2 + $0x50] sm:$0xff]  ;;  %v188_v56 = vld [vmem:[#allocation2 + $0x48] sm:$0xff] }
  0x2f   :  { %124 = vmatprep.subr.mxu0 %v75_v26  ;;  %268 = vmatpush1.msra.mxu1 %v197_v39  ;;  %v187_v57 = vld [vmem:[#allocation2 + $0x40] sm:$0xff]  ;;  %v186_v58 = vld [vmem:[#allocation2 + $0x38] sm:$0xff]  ;;  %v185_v59 = vld [vmem:[#allocation2 + $0x30] sm:$0xff] }
  0x30   :  { %125 = vmatpush1.msra.mxu0 %v74_v28  ;;  %269 = vmatprep.subr.mxu1 %v196_v41  ;;  %v184_v60 = vld [vmem:[#allocation2 + $0x28] sm:$0xff]  ;;  %v183_v61 = vld [vmem:[#allocation2 + $0x20] sm:$0xff]  ;;  %v182_v62 = vld [vmem:[#allocation2 + $0x18] sm:$0xff] }
  0x31   :  { %126 = vmatprep.subr.mxu0 %v73_v30  ;;  %270 = vmatpush1.msra.mxu1 %v195_v43  ;;  %v181_v63 = vld [vmem:[#allocation2 + $0x10] sm:$0xff]  ;;  %v180_v0 = vld [vmem:[#allocation2 + $0x8] sm:$0xff]  ;;  %v179_v1 = vld [vmem:[#allocation2] sm:$0xff] }
  0x32   :  { %127 = vmatpush1.msra.mxu0 %v72_v32  ;;  %271 = vmatprep.subr.mxu1 %v194_v45  ;;  %v242_v2 = vld [vmem:[#allocation2 + $0x1f8] sm:$0xff]  ;;  %v241_v3 = vld [vmem:[#allocation2 + $0x1f0] sm:$0xff]  ;;  %v240_v4 = vld [vmem:[#allocation2 + $0x1e8] sm:$0xff] }
  0x33   :  { %128 = vmatprep.subr.mxu0 %v71_v34  ;;  %272 = vmatpush1.msra.mxu1 %v193_v47  ;;  %v239_v5 = vld [vmem:[#allocation2 + $0x1e0] sm:$0xff]  ;;  %v238_v6 = vld [vmem:[#allocation2 + $0x1d8] sm:$0xff]  ;;  %v237_v7 = vld [vmem:[#allocation2 + $0x1d0] sm:$0xff] }
  0x34   :  { %129 = vmatpush1.msra.mxu0 %v70_v36  ;;  %273 = vmatprep.subr.mxu1 %v192_v49  ;;  %v236_v8 = vld [vmem:[#allocation2 + $0x1c8] sm:$0xff]  ;;  %v235_v9 = vld [vmem:[#allocation2 + $0x1c0] sm:$0xff]  ;;  %v234_v10 = vld [vmem:[#allocation2 + $0x1b8] sm:$0xff] }
  0x35   :  { %130 = vmatprep.subr.mxu0 %v69_v38  ;;  %274 = vmatpush1.msra.mxu1 %v191_v51  ;;  %v233_v11 = vld [vmem:[#allocation2 + $0x1b0] sm:$0xff]  ;;  %v232_v12 = vld [vmem:[#allocation2 + $0x1a8] sm:$0xff]  ;;  %v231_v13 = vld [vmem:[#allocation2 + $0x1a0] sm:$0xff] }
  0x36   :  { %131 = vmatpush1.msra.mxu0 %v68_v40  ;;  %275 = vmatprep.subr.mxu1 %v190_v53  ;;  %v230_v14 = vld [vmem:[#allocation2 + $0x198] sm:$0xff]  ;;  %v229_v15 = vld [vmem:[#allocation2 + $0x190] sm:$0xff]  ;;  %v228_v16 = vld [vmem:[#allocation2 + $0x188] sm:$0xff] }
  0x37   :  { %132 = vmatprep.subr.mxu0 %v67_v42  ;;  %276 = vmatpush1.msra.mxu1 %v189_v55  ;;  %v227_v17 = vld [vmem:[#allocation2 + $0x180] sm:$0xff]  ;;  %v226_v18 = vld [vmem:[#allocation2 + $0x178] sm:$0xff]  ;;  %v225_v19 = vld [vmem:[#allocation2 + $0x170] sm:$0xff] }
  0x38   :  { %133 = vmatpush1.msra.mxu0 %v66_v44  ;;  %277 = vmatprep.subr.mxu1 %v188_v56  ;;  %v224_v20 = vld [vmem:[#allocation2 + $0x168] sm:$0xff]  ;;  %v223_v21 = vld [vmem:[#allocation2 + $0x160] sm:$0xff]  ;;  %v222_v22 = vld [vmem:[#allocation2 + $0x158] sm:$0xff] }
  0x39   :  { %134 = vmatprep.subr.mxu0 %v65_v46  ;;  %278 = vmatpush1.msra.mxu1 %v187_v57  ;;  %v221_v23 = vld [vmem:[#allocation2 + $0x150] sm:$0xff]  ;;  %v220_v24 = vld [vmem:[#allocation2 + $0x148] sm:$0xff]  ;;  %v219_v25 = vld [vmem:[#allocation2 + $0x140] sm:$0xff] }
  0x3a   :  { %135 = vmatpush1.msra.mxu0 %v64_v48  ;;  %279 = vmatprep.subr.mxu1 %v186_v58  ;;  %v218_v26 = vld [vmem:[#allocation2 + $0x138] sm:$0xff]  ;;  %v217_v27 = vld [vmem:[#allocation2 + $0x130] sm:$0xff]  ;;  %v216_v28 = vld [vmem:[#allocation2 + $0x128] sm:$0xff] }
  0x3b   :  { %136 = vmatprep.subr.mxu0 %v63_v50  ;;  %280 = vmatpush1.msra.mxu1 %v185_v59  ;;  %v215_v29 = vld [vmem:[#allocation2 + $0x120] sm:$0xff]  ;;  %v214_v30 = vld [vmem:[#allocation2 + $0x118] sm:$0xff]  ;;  %v213_v31 = vld [vmem:[#allocation2 + $0x110] sm:$0xff] }
  0x3c   :  { %137 = vmatpush1.msra.mxu0 %v62_v52  ;;  %281 = vmatprep.subr.mxu1 %v184_v60  ;;  %v212_v32 = vld [vmem:[#allocation2 + $0x108] sm:$0xff]  ;;  %v211_v33 = vld [vmem:[#allocation2 + $0x100] sm:$0xff]  ;;  %v359_v34 = vld [vmem:[#allocation5 + $0xf8] sm:$0xff] }
  0x3d   :  { %171 = vmatmul.mubr.f32.vlgmr.msra.gmra.mxu0 %v61_v54  ;;  %282 = vmatpush1.msra.mxu1 %v183_v61  ;;  %v358_v35 = vld [vmem:[#allocation5 + $0xf0] sm:$0xff]  ;;  %v357_v36 = vld [vmem:[#allocation5 + $0xe8] sm:$0xff]  ;;  %v356_v37 = vld [vmem:[#allocation5 + $0xe0] sm:$0xff] }
  0x3e   :  { %283 = vmatprep.subr.mxu1 %v182_v62  ;;  %404 = vmatprep.subr.mxu0 %v359_v34  ;;  %v355_v38 = vld [vmem:[#allocation5 + $0xd8] sm:$0xff]  ;;  %v354_v39 = vld [vmem:[#allocation5 + $0xd0] sm:$0xff]  ;;  %v353_v40 = vld [vmem:[#allocation5 + $0xc8] sm:$0xff] }
  0x3f   :  { %284 = vmatpush1.msra.mxu1 %v181_v63  ;;  %405 = vmatpush1.msra.mxu0 %v358_v35  ;;  %v352_v41 = vld [vmem:[#allocation5 + $0xc0] sm:$0xff]  ;;  %v351_v42 = vld [vmem:[#allocation5 + $0xb8] sm:$0xff]  ;;  %v350_v43 = vld [vmem:[#allocation5 + $0xb0] sm:$0xff] }
  0x40   :  { %285 = vmatprep.subr.mxu1 %v180_v0  ;;  %406 = vmatprep.subr.mxu0 %v357_v36  ;;  %v349_v44 = vld [vmem:[#allocation5 + $0xa8] sm:$0xff]  ;;  %v348_v45 = vld [vmem:[#allocation5 + $0xa0] sm:$0xff]  ;;  %v347_v46 = vld [vmem:[#allocation5 + $0x98] sm:$0xff] }
  0x41   :  { %286 = vmatpush1.msra.mxu1 %v179_v1  ;;  %407 = vmatpush1.msra.mxu0 %v356_v37  ;;  %v346_v47 = vld [vmem:[#allocation5 + $0x90] sm:$0xff]  ;;  %v345_v48 = vld [vmem:[#allocation5 + $0x88] sm:$0xff]  ;;  %v344_v49 = vld [vmem:[#allocation5 + $0x80] sm:$0xff] }
  0x42   :  { %287 = vmatprep.subr.mxu1 %v242_v2  ;;  %408 = vmatprep.subr.mxu0 %v355_v38  ;;  %v343_v50 = vld [vmem:[#allocation5 + $0x78] sm:$0xff]  ;;  %v342_v51 = vld [vmem:[#allocation5 + $0x70] sm:$0xff]  ;;  %v341_v52 = vld [vmem:[#allocation5 + $0x68] sm:$0xff] }
  0x43   :  { %288 = vmatpush2.msra.mxu1 %v241_v3  ;;  %409 = vmatpush1.msra.mxu0 %v354_v39  ;;  %v340_v53 = vld [vmem:[#allocation5 + $0x60] sm:$0xff]  ;;  %v339_v54 = vld [vmem:[#allocation5 + $0x58] sm:$0xff]  ;;  %v338_v55 = vld [vmem:[#allocation5 + $0x50] sm:$0xff] }
  0x44   :  { %289 = vmatprep.subr.mxu1 %v240_v4  ;;  %410 = vmatprep.subr.mxu0 %v353_v40  ;;  %v337_v56 = vld [vmem:[#allocation5 + $0x48] sm:$0xff]  ;;  %v336_v57 = vld [vmem:[#allocation5 + $0x40] sm:$0xff]  ;;  %v335_v58 = vld [vmem:[#allocation5 + $0x38] sm:$0xff] }
  0x45   :  { %290 = vmatpush2.msra.mxu1 %v239_v5  ;;  %411 = vmatpush1.msra.mxu0 %v352_v41  ;;  %v334_v59 = vld [vmem:[#allocation5 + $0x30] sm:$0xff]  ;;  %v333_v60 = vld [vmem:[#allocation5 + $0x28] sm:$0xff]  ;;  %v332_v61 = vld [vmem:[#allocation5 + $0x20] sm:$0xff] }
  0x46   :  { %291 = vmatprep.subr.mxu1 %v238_v6  ;;  %412 = vmatprep.subr.mxu0 %v351_v42  ;;  %v331_v62 = vld [vmem:[#allocation5 + $0x18] sm:$0xff]  ;;  %v330_v63 = vld [vmem:[#allocation5 + $0x10] sm:$0xff]  ;;  %v329_v0 = vld [vmem:[#allocation5 + $0x8] sm:$0xff] }
  0x47   :  { %292 = vmatpush2.msra.mxu1 %v237_v7  ;;  %413 = vmatpush1.msra.mxu0 %v350_v43  ;;  %v328_v1 = vld [vmem:[#allocation5] sm:$0xff]  ;;  %v391_v2 = vld [vmem:[#allocation5 + $0x1f8] sm:$0xff]  ;;  %v390_v3 = vld [vmem:[#allocation5 + $0x1f0] sm:$0xff] }
  0x48   :  { %293 = vmatprep.subr.mxu1 %v236_v8  ;;  %414 = vmatprep.subr.mxu0 %v349_v44  ;;  %v389_v4 = vld [vmem:[#allocation5 + $0x1e8] sm:$0xff]  ;;  %v388_v5 = vld [vmem:[#allocation5 + $0x1e0] sm:$0xff]  ;;  %v387_v6 = vld [vmem:[#allocation5 + $0x1d8] sm:$0xff] }
  0x49   :  { %294 = vmatpush2.msra.mxu1 %v235_v9  ;;  %415 = vmatpush1.msra.mxu0 %v348_v45  ;;  %v386_v7 = vld [vmem:[#allocation5 + $0x1d0] sm:$0xff]  ;;  %v385_v8 = vld [vmem:[#allocation5 + $0x1c8] sm:$0xff]  ;;  %v384_v9 = vld [vmem:[#allocation5 + $0x1c0] sm:$0xff] }
  0x4a   :  { %295 = vmatprep.subr.mxu1 %v234_v10  ;;  %416 = vmatprep.subr.mxu0 %v347_v46  ;;  %v383_v10 = vld [vmem:[#allocation5 + $0x1b8] sm:$0xff]  ;;  %v366_v40 = vld [vmem:[#allocation5 + $0x130] sm:$0xff]  ;;  %v365_v41 = vld [vmem:[#allocation5 + $0x128] sm:$0xff] }
  0x4b   :  { %296 = vmatpush2.msra.mxu1 %v233_v11  ;;  %417 = vmatpush1.msra.mxu0 %v346_v47  ;;  %v382_v11 = vld [vmem:[#allocation5 + $0x1b0] sm:$0xff]  ;;  %v367_v39 = vld [vmem:[#allocation5 + $0x138] sm:$0xff]  ;;  %v364_v42 = vld [vmem:[#allocation5 + $0x120] sm:$0xff] }
  0x4c   :  { %297 = vmatprep.subr.mxu1 %v232_v12  ;;  %418 = vmatprep.subr.mxu0 %v345_v48  ;;  %v381_v12 = vld [vmem:[#allocation5 + $0x1a8] sm:$0xff]  ;;  %v363_v43 = vld [vmem:[#allocation5 + $0x118] sm:$0xff]  ;;  %v362_v44 = vld [vmem:[#allocation5 + $0x110] sm:$0xff] }
  0x4d   :  { %298 = vmatpush2.msra.mxu1 %v231_v13  ;;  %419 = vmatpush1.msra.mxu0 %v344_v49  ;;  %v380_v13 = vld [vmem:[#allocation5 + $0x1a0] sm:$0xff]  ;;  %v361_v45 = vld [vmem:[#allocation5 + $0x108] sm:$0xff]  ;;  %v508_v47 = vld [vmem:[%s1012_s7 + $0xf8] sm:$0xff] }
  0x4e   :  { %299 = vmatprep.subr.mxu1 %v230_v14  ;;  %420 = vmatprep.subr.mxu0 %v343_v50  ;;  %v379_v14 = vld [vmem:[#allocation5 + $0x198] sm:$0xff]  ;;  %v360_v46 = vld [vmem:[#allocation5 + $0x100] sm:$0xff]  ;;  %v507_v49 = vld [vmem:[%s1012_s7 + $0xf0] sm:$0xff] }
  0x4f   :  { %300 = vmatpush2.msra.mxu1 %v229_v15  ;;  %421 = vmatpush1.msra.mxu0 %v342_v51  ;;  %v378_v15 = vld [vmem:[#allocation5 + $0x190] sm:$0xff]  ;;  %v492_v48 = vld [vmem:[%s1012_s7 + $0x78] sm:$0xff]  ;;  %v506_v51 = vld [vmem:[%s1012_s7 + $0xe8] sm:$0xff] }
  0x50   :  { %301 = vmatprep.subr.mxu1 %v228_v16  ;;  %422 = vmatprep.subr.mxu0 %v341_v52  ;;  %v377_v16 = vld [vmem:[#allocation5 + $0x188] sm:$0xff]  ;;  %v491_v50 = vld [vmem:[%s1012_s7 + $0x70] sm:$0xff] }
  0x51   :  { %302 = vmatpush2.msra.mxu1 %v227_v17  ;;  %423 = vmatpush1.msra.mxu0 %v340_v53  ;;  %v376_v17 = vld [vmem:[#allocation5 + $0x180] sm:$0xff]  ;;  %v490_v52 = vld [vmem:[%s1012_s7 + $0x68] sm:$0xff] }
  0x52   :  { %303 = vmatprep.subr.mxu1 %v226_v18  ;;  %424 = vmatprep.subr.mxu0 %v339_v54  ;;  %v375_v18 = vld [vmem:[#allocation5 + $0x178] sm:$0xff]  ;;  %v505_v53 = vld [vmem:[%s1012_s7 + $0xe0] sm:$0xff] }
  0x53   :  { %304 = vmatpush2.msra.mxu1 %v225_v19  ;;  %425 = vmatpush1.msra.mxu0 %v338_v55  ;;  %v374_v19 = vld [vmem:[#allocation5 + $0x170] sm:$0xff]  ;;  %v489_v54 = vld [vmem:[%s1012_s7 + $0x60] sm:$0xff]  ;;  %v504_v55 = vld [vmem:[%s1012_s7 + $0xd8] sm:$0xff] }
  0x54   :  { %305 = vmatprep.subr.mxu1 %v224_v20  ;;  %426 = vmatprep.subr.mxu0 %v337_v56  ;;  %v373_v20 = vld [vmem:[#allocation5 + $0x168] sm:$0xff]  ;;  %v488_v56 = vld [vmem:[%s1012_s7 + $0x58] sm:$0xff] }
  0x55   :  { %306 = vmatpush2.msra.mxu1 %v223_v21  ;;  %427 = vmatpush1.msra.mxu0 %v336_v57  ;;  %v372_v21 = vld [vmem:[#allocation5 + $0x160] sm:$0xff]  ;;  %v503_v57 = vld [vmem:[%s1012_s7 + $0xd0] sm:$0xff] }
  0x56   :  { %307 = vmatprep.subr.mxu1 %v222_v22  ;;  %428 = vmatprep.subr.mxu0 %v335_v58  ;;  %v371_v22 = vld [vmem:[#allocation5 + $0x158] sm:$0xff]  ;;  %v487_v58 = vld [vmem:[%s1012_s7 + $0x50] sm:$0xff] }
  0x57   :  { %308 = vmatpush2.msra.mxu1 %v221_v23  ;;  %429 = vmatpush1.msra.mxu0 %v334_v59  ;;  %v370_v23 = vld [vmem:[#allocation5 + $0x150] sm:$0xff]  ;;  %v502_v59 = vld [vmem:[%s1012_s7 + $0xc8] sm:$0xff] }
  0x58   :  { %309 = vmatprep.subr.mxu1 %v220_v24  ;;  %430 = vmatprep.subr.mxu0 %v333_v60  ;;  %v369_v24 = vld [vmem:[#allocation5 + $0x148] sm:$0xff] }
  0x59   :  { %310 = vmatpush2.msra.mxu1 %v219_v25  ;;  %431 = vmatpush1.msra.mxu0 %v332_v61  ;;  %v368_v25 = vld [vmem:[#allocation5 + $0x140] sm:$0xff]  ;;  %v486_v60 = vld [vmem:[%s1012_s7 + $0x48] sm:$0xff] }
  0x5a   :  { %311 = vmatprep.subr.mxu1 %v218_v26  ;;  %432 = vmatprep.subr.mxu0 %v331_v62  ;;  %v96_v26 = vlaneseq  ;;  %v501_v61 = vld [vmem:[%s1012_s7 + $0xc0] sm:$0xff] }
  0x5b   :  { %312 = vmatpush2.msra.mxu1 %v217_v27  ;;  %433 = vmatpush1.msra.mxu0 %v330_v63  ;;  %v485_v62 = vld [vmem:[%s1012_s7 + $0x40] sm:$0xff]  ;;  %v500_v63 = vld [vmem:[%s1012_s7 + $0xb8] sm:$0xff] }
  0x5c   :  { %313 = vmatprep.subr.mxu1 %v216_v28  ;;  %434 = vmatprep.subr.mxu0 %v329_v0  ;;  %v97_v27 = vshrl.u32 %v96_v26, 7  ;;  %v484_v0 = vld [vmem:[%s1012_s7 + $0x38] sm:$0xff] }
  0x5d   :  { %314 = vmatpush2.msra.mxu1 %v215_v29  ;;  %435 = vmatpush1.msra.mxu0 %v328_v1  ;;  %v94_v29 = vld [vmem:[%s1007_s2] sm:$0x3]  ;;  %v499_v1 = vld [vmem:[%s1012_s7 + $0xb0] sm:$0xff] }
  0x5e   :  { %315 = vmatprep.subr.mxu1 %v214_v30  ;;  %436 = vmatprep.subr.mxu0 %v391_v2  ;;  %v884_v28 = vsub.s32 0, %v97_v27  ;;  %v889_v30 = vsub.s32 1, %v97_v27  ;;  %v483_v2 = vld [vmem:[%s1012_s7 + $0x30] sm:$0xff] }
  0x5f   :  { %316 = vmatpush2.msra.mxu1 %v213_v31  ;;  %437 = vmatpush2.msra.mxu0 %v390_v3  ;;  %v498_v3 = vld [vmem:[%s1012_s7 + $0xa8] sm:$0xff] }
  0x60   :  { %317 = vmatprep.subr.mxu1 %v212_v32  ;;  %438 = vmatprep.subr.mxu0 %v389_v4  ;;  %v99_v31 = vrot.slane %v94_v29, %v884_v28  ;;  %v103_v32 = vrot.slane %v94_v29, %v889_v30  ;;  %v482_v4 = vld [vmem:[%s1012_s7 + $0x28] sm:$0xff] }
  0x61   :  { %318 = vmatpush2.msra.mxu1 %v211_v33  ;;  %439 = vmatpush2.msra.mxu0 %v388_v5  ;;  %v497_v5 = vld [vmem:[%s1012_s7 + $0xa0] sm:$0xff] }
  0x62   :  { %440 = vmatprep.subr.mxu0 %v387_v6  ;;  %612 = vmatprep.subr.mxu1 %v508_v47  ;;  %v481_v6 = vld [vmem:[%s1012_s7 + $0x20] sm:$0xff] }
  0x63   :  { %441 = vmatpush2.msra.mxu0 %v386_v7  ;;  %v243_v7 = vld [vmem:[%s1009_s4] sm:$0x3] }
  0x64   :  { %442 = vmatprep.subr.mxu0 %v385_v8  ;;  %v248_v8 = vrot.slane %v243_v7, %v884_v28 }
  0x65   :  { %443 = vmatpush2.msra.mxu0 %v384_v9  ;;  %v252_v9 = vrot.slane %v243_v7, %v889_v30 }
  0x66   :  { %444 = vmatprep.subr.mxu0 %v383_v10 }
  0x67   :  { %445 = vmatpush2.msra.mxu0 %v382_v11 }
  0x68   :  { %446 = vmatprep.subr.mxu0 %v381_v12 }
  0x69   :  { %447 = vmatpush2.msra.mxu0 %v380_v13 }
  0x6a   :  { %448 = vmatprep.subr.mxu0 %v379_v14 }
  0x6b   :  { %449 = vmatpush2.msra.mxu0 %v378_v15 }
  0x6c   :  { %450 = vmatprep.subr.mxu0 %v377_v16  ;;  %v496_v16 = vld [vmem:[%s1012_s7 + $0x98] sm:$0xff] }
  0x6d   :  { %451 = vmatpush2.msra.mxu0 %v376_v17  ;;  %v480_v17 = vld [vmem:[%s1012_s7 + $0x18] sm:$0xff] }
  0x6e   :  { %452 = vmatprep.subr.mxu0 %v375_v18  ;;  %v495_v18 = vld [vmem:[%s1012_s7 + $0x90] sm:$0xff] }
  0x6f   :  { %453 = vmatpush2.msra.mxu0 %v374_v19  ;;  %v479_v19 = vld [vmem:[%s1012_s7 + $0x10] sm:$0xff] }
  0x70   :  { %454 = vmatprep.subr.mxu0 %v373_v20  ;;  %v494_v20 = vld [vmem:[%s1012_s7 + $0x88] sm:$0xff] }
  0x71   :  { %455 = vmatpush2.msra.mxu0 %v372_v21  ;;  %v478_v21 = vld [vmem:[%s1012_s7 + $0x8] sm:$0xff] }
  0x72   :  { %456 = vmatprep.subr.mxu0 %v371_v22  ;;  %v493_v22 = vld [vmem:[%s1012_s7 + $0x80] sm:$0xff] }
  0x73   :  { %457 = vmatpush2.msra.mxu0 %v370_v23  ;;  %v477_v23 = vld [vmem:[%s1012_s7] sm:$0xff] }
  0x74   :  { %458 = vmatprep.subr.mxu0 %v369_v24  ;;  %v392_v24 = vld [vmem:[%s1011_s6] sm:$0x3]  ;;  %s728_s6 = smov [#allocation7]  }
  0x75   :  { %459 = vmatpush2.msra.mxu0 %v368_v25  ;;  %v397_v25 = vrot.slane %v392_v24, %v884_v28  ;;  %v401_v26 = vrot.slane %v392_v24, %v889_v30  ;;  %s600_s10 = sshll.u32 %s728_s6, 4  ;;  %s601_s10 = int_to_ptr.vmem [resolvable:$true] %s600_s10 }
  0x76   :  { %460 = vmatprep.subr.mxu0 %v367_v39  ;;  %s697_s11 = scalar_lea.vmem %s601_s10, 128  ;;  %p702_p11 = scmp.lt.s32.totalorder %s601_s10, %s601_s10 }
  0x77   :  { %461 = vmatpush2.msra.mxu0 %v366_v40  ;;  %p698_p10 = scmp.ne.s32.totalorder %s601_s10, %s697_s11  ;;  %p703_p12 = scmp.lt.s32.totalorder %s697_s11, %s697_s11 }
  0x78   :  { %462 = vmatprep.subr.mxu0 %v365_v41 }
  0x79   :  { %463 = vmatpush2.msra.mxu0 %v364_v42  ;;  %p704_p13 = por %p703_p12, %p702_p11 }
  0x7a   :  { %464 = vmatprep.subr.mxu0 %v363_v43 }
  0x7b   :  { %465 = vmatpush2.msra.mxu0 %v362_v44  ;;  %p705_p0 = pnand %p704_p13, %p698_p10 }
  0x7c   :  { %466 = vmatprep.subr.mxu0 %v361_v45 }
  0x7d   :  { %467 = vmatpush2.msra.mxu0 %v360_v46 }
  0xfd   :  { %v172_v33 = vpop.f32.mrf.mxu0 }
  0xfe   :  { %v173_v34 = vadd.f32 %v172_v33, %v99_v31 }
  0xff   :  { %v174_v35 = vpop.f32.mrf.mxu0 }
 0x100   :  { %v175_v36 = vadd.f32 %v174_v35, %v103_v32  ;;  %v177_v38 = vmax.f32 %v173_v34, 0.0 }
 0x102   :  { %v178_v37 = vmax.f32 %v175_v36, 0.0  ;;  %v610_v36 = vld [vmem:[%s1013_s8] ss:$0 sm:$0xff] }
 0x104   :  { %319 = vmatprep.mubr.f32.mxu1 %v178_v37 }
 0x105   :  { %320 = vmatmul.mubr.f32.vlgmr.msra.gmra.mxu1 %v177_v38 }
 0x106   :  { %613 = vmatpush3.msra.mxu1 %v492_v48 }
 0x107   :  { %614 = vmatprep.subr.mxu1 %v507_v49 }
 0x108   :  { %615 = vmatpush3.msra.mxu1 %v491_v50 }
 0x109   :  { %616 = vmatprep.subr.mxu1 %v506_v51 }
 0x10a   :  { %617 = vmatpush3.msra.mxu1 %v490_v52 }
 0x10b   :  { %618 = vmatprep.subr.mxu1 %v505_v53 }
 0x10c   :  { %619 = vmatpush3.msra.mxu1 %v489_v54 }
 0x10d   :  { %620 = vmatprep.subr.mxu1 %v504_v55 }
 0x10e   :  { %621 = vmatpush3.msra.mxu1 %v488_v56 }
 0x10f   :  { %622 = vmatprep.subr.mxu1 %v503_v57 }
 0x110   :  { %623 = vmatpush3.msra.mxu1 %v487_v58 }
 0x111   :  { %624 = vmatprep.subr.mxu1 %v502_v59 }
 0x112   :  { %625 = vmatpush3.msra.mxu1 %v486_v60 }
 0x113   :  { %626 = vmatprep.subr.mxu1 %v501_v61 }
 0x114   :  { %627 = vmatpush3.msra.mxu1 %v485_v62 }
 0x115   :  { %628 = vmatprep.subr.mxu1 %v500_v63 }
 0x116   :  { %629 = vmatpush3.msra.mxu1 %v484_v0 }
 0x117   :  { %630 = vmatprep.subr.mxu1 %v499_v1 }
 0x118   :  { %631 = vmatpush3.msra.mxu1 %v483_v2 }
 0x119   :  { %632 = vmatprep.subr.mxu1 %v498_v3 }
 0x11a   :  { %633 = vmatpush3.msra.mxu1 %v482_v4 }
 0x11b   :  { %634 = vmatprep.subr.mxu1 %v497_v5 }
 0x11c   :  { %635 = vmatpush3.msra.mxu1 %v481_v6 }
 0x11d   :  { %636 = vmatprep.subr.mxu1 %v496_v16 }
 0x11e   :  { %637 = vmatpush3.msra.mxu1 %v480_v17 }
 0x11f   :  { %638 = vmatprep.subr.mxu1 %v495_v18 }
 0x120   :  { %639 = vmatpush3.msra.mxu1 %v479_v19 }
 0x121   :  { %640 = vmatprep.subr.mxu1 %v494_v20 }
 0x122   :  { %641 = vmatpush3.msra.mxu1 %v478_v21 }
 0x123   :  { %642 = vmatprep.subr.mxu1 %v493_v22 }
 0x124   :  { %643 = vmatpush3.msra.mxu1 %v477_v23 }
 0x1c5   :  { %v321_v10 = vpop.f32.mrf.mxu1 }
 0x1c6   :  { %v322_v11 = vadd.f32 %v321_v10, %v248_v8 }
 0x1c7   :  { %v323_v12 = vpop.f32.mrf.mxu1 }
 0x1c8   :  { %v324_v13 = vadd.f32 %v323_v12, %v252_v9  ;;  %v326_v15 = vmax.f32 %v322_v11, 0.0 }
 0x1ca   :  { %v327_v14 = vmax.f32 %v324_v13, 0.0 }
 0x1cc   :  { %468 = vmatprep.mubr.f32.mxu0 %v327_v14 }
 0x1cd   :  { %469 = vmatmul.mubr.f32.vlgmr.msra.gmra.mxu0 %v326_v15 }
 0x28d   :  { %v470_v27 = vpop.f32.mrf.mxu0 }
 0x28e   :  { %v471_v29 = vadd.f32 %v470_v27, %v397_v25 }
 0x28f   :  { %v472_v31 = vpop.f32.mrf.mxu0 }
 0x290   :  { %v473_v32 = vadd.f32 %v472_v31, %v401_v26  ;;  %v475_v34 = vmax.f32 %v471_v29, 0.0 }
 0x292   :  { %v476_v33 = vmax.f32 %v473_v32, 0.0 }
 0x294   :  { %580 = vmatprep.mubr.f32.mxu1 %v476_v33 }
 0x295   :  { %581 = vmatmul.mubr.f32.vlgmr.msra.gmra.mxu1 %v475_v34 }
 0x355   :  { %v644_v35 = vpop.f32.mrf.mxu1 }
 0x357   :  { %v645_v37 = vpop.f32.mrf.mxu1 }
 0x358   :  { %v646_v38 = vadd.f32 %v645_v37, %v644_v35 }
 0x35a   :  { %v583_v39 = vadd.f32 %v646_v38, %v610_v36 }
 0x35c   :  { %v611_v40 = vmul.f32 -1.442695, %v583_v39 }
 0x35e   :  { %653 = vpow2.f32 %v611_v40 }
 0x36b   :  { %v654_v28 = vpop.eup %653 }
 0x36c   :  { %v589_v30 = vadd.f32 1.0, %v654_v28 }
 0x36e   :  { %655 = vrcp.f32 %v589_v30 }
 0x37b   :  { %v656_v41 = vpop.eup %655 }
 0x37c   :  { %593 = vst.msk [vmem:[#allocation7] sm:$0xff] %vm592_vm0, %v656_v41 }
 0x37d   :  { %708 = shalt.err (!%p705_p0)
}
 0x37e   :  { %603 = dma.vmem_to_hbm [thread:$0]  %s601_s10, 128, %s1014_s9, [#allocation4]  }
 0x37f   :  { %721 = dma.done.wait [#allocation4], 128  }
 0x380   :  { %722 = vsyncadd [#allocation4], 4294967168 }
 0x381   :  { %607 = vsyncpa [#allocation3], 1 }
 0x382   :  { %608 = vsyncpa [#allocation6], 1 }
 0x383   :  { %609 = vsyncpa [#allocation4], 1 }

</bundles_post_ra>
